<compile_context>
chip_gen: v7x
topology: tpu7x:2x2x1
jax: 0.10.0
libtpu: 0.0.40
codegen_flags: <defaults>
</compile_context>

<pallas_src>
from functools import partial

import jax
import jax.numpy as jnp
import numpy as np
from jax.experimental import pallas as pl
from jax.experimental.pallas import tpu as pltpu

LANES = 128
GRAN = 16          # bf16 native second-minor tile (16,128); row granularity


def dag_loss_kernel(geom_ref, ctx_ref, out_ref):
    """geom_ref : (8, tr, 128) bf16 = [bbox l,t,r,b, tgt l,t,r,b]
       ctx_ref  : (3, tr, 128) bf16 = [cls, quality, signed mask(+1/-1/0)]
       out_ref  : (6, 8, 128) f32 partial sums, resident across the inner axis:
                  [n_pos, n_neg, reg_sum, cls_pos_sum, cls_neg_sum, q_sum]"""
    i = pl.program_id(1)

    @pl.when(i == 0)
    def _init():
        out_ref[...] = jnp.zeros_like(out_ref)

    tr = geom_ref.shape[1]

    # upcast right after the loads; all math stays f32
    pred_l = geom_ref[0].astype(jnp.float32)
    pred_t = geom_ref[1].astype(jnp.float32)
    pred_r = geom_ref[2].astype(jnp.float32)
    pred_b = geom_ref[3].astype(jnp.float32)
    tgt_l = geom_ref[4].astype(jnp.float32)
    tgt_t = geom_ref[5].astype(jnp.float32)
    tgt_r = geom_ref[6].astype(jnp.float32)
    tgt_b = geom_ref[7].astype(jnp.float32)

    cls = ctx_ref[0].astype(jnp.float32)
    qual = ctx_ref[1].astype(jnp.float32)
    sgn = ctx_ref[2]                                  # bf16 in {-1, 0, +1}
    pos = (sgn > 0).astype(jnp.float32)
    neg = (sgn < 0).astype(jnp.float32)

    # ---- calc_iou (dense, masked) ----------------------------------------
    target_area = (tgt_l + tgt_r) * (tgt_t + tgt_b)
    pred_area = (pred_l + pred_r) * (pred_t + pred_b)
    w_int = jnp.minimum(pred_l, tgt_l) + jnp.minimum(pred_r, tgt_r)
    h_int = jnp.minimum(pred_b, tgt_b) + jnp.minimum(pred_t, tgt_t)
    area_int = w_int * h_int
    area_union = target_area + pred_area - area_int
    # TODO(synk): pl.reciprocal(approx=True) would free EUP/VALU cycles once
    # HBM stops binding (v7x), but its ~2^-12 rel err feeds -log(iou); kept
    # exact division to preserve the module's numerics.
    iou = (area_int + 1.0) / (area_union + 1.0)

    # ---- add_iouloss partial term: -log(iou) over positives --------------
    reg_term = -jnp.log(jnp.where(pos > 0.0, iou, 1.0)) * pos

    # ---- _weighted_BCE (cls), CSE'd BCE-with-logits ------------------------
    # base = max(x,0)+log1p(exp(-|x|)); bce(x,1)=base-x; bce(x,0)=base
    base_c = jnp.maximum(cls, 0.0) + jnp.log1p(jnp.exp(-jnp.abs(cls)))
    cls_pos_term = (base_c - cls) * pos
    cls_neg_term = base_c * neg

    # ---- _quality_loss: BCEWithLogits(quality[pos], iou[pos]) -------------
    q_term = (jnp.maximum(qual, 0.0) - qual * (iou * pos)
              + jnp.log1p(jnp.exp(-jnp.abs(qual)))) * pos

    # Fold each (tr,128) term down to one (8,128) vreg (pure VALU adds along
    # the sublane-block axis; cross-lane reduce deferred to the wrapper).
    def fold(t):
        return t.reshape(tr // 8, 8, LANES).sum(axis=0)

    out_ref[0] += fold(pos)
    out_ref[1] += fold(neg)
    out_ref[2] += fold(reg_term)
    out_ref[3] += fold(cls_pos_term)
    out_ref[4] += fold(cls_neg_term)
    out_ref[5] += fold(q_term)


@partial(jax.jit, static_argnames=("tile_rows", "num_splits"))
def dag_forward_losses(bbox_pred, cls_pred, quality, label, reg_target, *,
                       tile_rows=1024, num_splits=2):
    """Equivalent of DAG_.forward() *after* connect_model: returns
    (cls_loss, None, reg_loss, quality_loss).

    NOTE: n_pos==0 / n_neg==0 returns 0 instead of the reference's NaN
    (intentional divergence).  Labels are interpreted exactly like the module:
    ==1 -> positive, ==0 -> negative, anything else ignored.
    """
    B, C, H, W = bbox_pred.shape
    assert C == 4
    N = B * H * W
    num_splits = max(1, int(num_splits))

    rows_needed = -(-N // LANES)
    rows_per_split = -(-rows_needed // num_splits)
    rows_per_split = -(-rows_per_split // GRAN) * GRAN
    tr = max(GRAN, min(int(tile_rows), rows_per_split))
    tr = (tr // GRAN) * GRAN
    rows_per_split = -(-rows_per_split // tr) * tr
    rows_total = rows_per_split * num_splits
    inner = rows_per_split // tr
    n_pad = rows_total * LANES - N
    grid = (num_splits, inner)

    # ---- pack: bf16, channel-major, (8,128)-aligned slabs (fused in this jit)
    # TODO(synk): if reg_target were produced channel-major upstream, the
    # (3,0,1,2) transpose pass here would disappear entirely.
    bbox_cm = jnp.transpose(bbox_pred.astype(jnp.bfloat16),
                            (1, 0, 2, 3)).reshape(4, N)
    tgt_cm = jnp.transpose(reg_target.astype(jnp.bfloat16),
                           (3, 0, 1, 2)).reshape(4, N)
    geom = jnp.concatenate([bbox_cm, tgt_cm], axis=0)              # (8, N)
    geom = jnp.pad(geom, ((0, 0), (0, n_pad))).reshape(8, rows_total, LANES)

    lab = label.reshape(N)
    # signed mask computed in the label's own precision (exact .eq semantics),
    # then shipped as bf16: +1 pos, -1 neg, 0 ignore (padding -> 0).
    sgn = (lab == 1).astype(jnp.bfloat16) - (lab == 0).astype(jnp.bfloat16)
    ctx = jnp.stack([cls_pred.astype(jnp.bfloat16).reshape(N),
                     quality.astype(jnp.bfloat16).reshape(N),
                     sgn], axis=0)                                  # (3, N)
    ctx = jnp.pad(ctx, ((0, 0), (0, n_pad))).reshape(3, rows_total, LANES)

    cost = pl.CostEstimate(
        flops=int(rows_total * LANES * 50),
        transcendentals=int(rows_total * LANES * 5),
        bytes_accessed=int(rows_total * LANES * (8 * 2 + 3 * 2)
                           + num_splits * 6 * 8 * LANES * 4),
    )

    partials = pl.pallas_call(
        dag_loss_kernel,
        out_shape=jax.ShapeDtypeStruct((num_splits, 6, 8, LANES), jnp.float32),
        grid_spec=pltpu.PrefetchScalarGridSpec(
            num_scalar_prefetch=0,
            grid=grid,
            in_specs=[
                pl.BlockSpec((8, tr, LANES), lambda c, i: (0, c * inner + i, 0)),
                pl.BlockSpec((3, tr, LANES), lambda c, i: (0, c * inner + i, 0)),
            ],
            # per-split partial-sum block (no cross-core write race); resident
            # across the inner "arbitrary" axis -> acts as the accumulator.
            out_specs=pl.BlockSpec((None, 6, 8, LANES),
                                   lambda c, i: (c, 0, 0, 0)),
            scratch_shapes=[],
        ),
        compiler_params=pltpu.CompilerParams(
            dimension_semantics=("parallel", "arbitrary"),
            vmem_limit_bytes=32 * 1024 * 1024,
        ),
        cost_estimate=cost,
    )(geom, ctx)

    # Tiny final reduce + normalize; fused into the same XLA program.
    sums = jnp.sum(partials, axis=(0, 2, 3))            # (6,)
    n_pos, n_neg = sums[0], sums[1]
    inv_pos = jnp.where(n_pos > 0.0, 1.0 / jnp.maximum(n_pos, 1.0), 0.0)
    inv_neg = jnp.where(n_neg > 0.0, 1.0 / jnp.maximum(n_neg, 1.0), 0.0)
    cls_loss = 0.5 * sums[3] * inv_pos + 0.5 * sums[4] * inv_neg
    reg_loss = sums[2] * inv_pos
    quality_loss = sums[5] * inv_pos
    return cls_loss, None, reg_loss, quality_loss


# ------------------------- pure-JAX reference -------------------------------
def _ref_losses(bbox_pred, cls_pred, quality, label, reg_target):
    N = bbox_pred.shape[0] * bbox_pred.shape[2] * bbox_pred.shape[3]
    bp = jnp.transpose(bbox_pred, (0, 2, 3, 1)).reshape(N, 4)
    rt = reg_target.reshape(N, 4)
    lab = label.reshape(N)
    pos = (lab == 1.0).astype(jnp.float32)
    neg = (lab == 0.0).astype(jnp.float32)

    ta = (rt[:, 0] + rt[:, 2]) * (rt[:, 1] + rt[:, 3])
    pa = (bp[:, 0] + bp[:, 2]) * (bp[:, 1] + bp[:, 3])
    wi = jnp.minimum(bp[:, 0], rt[:, 0]) + jnp.minimum(bp[:, 2], rt[:, 2])
    hi = jnp.minimum(bp[:, 3], rt[:, 3]) + jnp.minimum(bp[:, 1], rt[:, 1])
    ai = wi * hi
    iou = (ai + 1.0) / (ta + pa - ai + 1.0)

    n_pos = jnp.sum(pos)
    n_neg = jnp.sum(neg)
    reg_loss = jnp.sum(-jnp.log(jnp.where(pos > 0, iou, 1.0)) * pos) / n_pos

    def bce(x, t):
        return jnp.maximum(x, 0.0) - x * t + jnp.log1p(jnp.exp(-jnp.abs(x)))

    c = cls_pred.reshape(N)
    cls_loss = 0.5 * (jnp.sum(bce(c, 1.0) * pos) / n_pos
                      + jnp.sum(bce(c, 0.0) * neg) / n_neg)
    q = quality.reshape(N)
    quality_loss = jnp.sum(bce(q, iou * pos) * pos) / n_pos
    return cls_loss, reg_loss, quality_loss


if __name__ == "__main__":
    # TODO(synk): self.features / self.connect_model / self.neck are None in
    # DAG_.__init__ (injected externally); the head outputs below are synthetic
    # deterministic stand-ins for what connect_model would produce.
    B, H, W = 8, 25, 25          # score_size = 25 in the module
    key = jax.random.PRNGKey(0)
    k1, k2, k3, k4, k5 = jax.random.split(key, 5)

    # The kernel ingests bf16; pre-round the head outputs to bf16 (and back to
    # f32) so the f32 pure-JAX reference sees exactly the same values and the
    # tight tolerance remains meaningful.
    def bf16_round(x):
        return x.astype(jnp.bfloat16).astype(jnp.float32)

    bbox_pred = bf16_round(jax.random.uniform(k1, (B, 4, H, W), jnp.float32,
                                              1.0, 10.0))
    reg_target = bf16_round(jax.random.uniform(k2, (B, H, W, 4), jnp.float32,
                                               1.0, 10.0))
    cls_pred = bf16_round(jax.random.normal(k3, (B, 1, H, W), jnp.float32))
    quality = bf16_round(jax.random.normal(k4, (B, 1, H, W), jnp.float32))
    u = jax.random.uniform(k5, (B, H, W))
    # labels in {1 (pos), 0 (neg), -1 (ignore)} as in the tracking module
    label = jnp.where(u < 0.2, 1.0, jnp.where(u < 0.9, 0.0, -1.0)
                      ).astype(jnp.float32)

    # tile_rows=16 forces a multi-step inner grid (2 splits x 2 steps) so both
    # the accumulate path and the per-split partial outputs are exercised.
    cls_loss, _none, reg_loss, quality_loss = dag_forward_losses(
        bbox_pred, cls_pred, quality, label, reg_target,
        tile_rows=16, num_splits=2)
    jax.block_until_ready((cls_loss, reg_loss, quality_loss))

    rc, rr, rq = _ref_losses(bbox_pred, cls_pred, quality, label, reg_target)
    np.testing.assert_allclose(np.array(cls_loss), np.array(rc),
                               rtol=1e-4, atol=1e-5)
    np.testing.assert_allclose(np.array(reg_loss), np.array(rr),
                               rtol=1e-4, atol=1e-5)
    np.testing.assert_allclose(np.array(quality_loss), np.array(rq),
                               rtol=1e-4, atol=1e-5)

    print("KERNEL_OK")
</pallas_src>

<mosaic_0001>
module attributes {stable_mosaic.version = 11 : i64} {
  func.func @dag_loss_kernel(%arg0: i32, %arg1: i32, %arg2: memref<8x16x128xbf16, #tpu.memory_space<vmem>>, %arg3: memref<3x16x128xbf16, #tpu.memory_space<vmem>>, %arg4: memref<1x6x8x128xf32, #tpu.memory_space<vmem>>) attributes {dimension_semantics = [#tpu.dimension_semantics<parallel>, #tpu.dimension_semantics<arbitrary>], iteration_bounds = array<i64: 2, 2>, scalar_prefetch = 0 : i64, scratch_operands = 0 : i64, tpu.core_type = #tpu.core_type<tc>, window_params = [{transform_indices = @transform_0, window_bounds = array<i64: 8, 16, 128>}, {transform_indices = @transform_1, window_bounds = array<i64: 3, 16, 128>}, {transform_indices = @transform_2, window_bounds = array<i64: 1, 6, 8, 128>}]} {
    %c0_i32 = arith.constant 0 : i32
    %0 = arith.cmpi eq, %arg1, %c0_i32 : i32
    %1 = arith.extui %0 : i1 to i32
    %c0_i32_0 = arith.constant 0 : i32
    %2 = arith.cmpi ne, %1, %c0_i32_0 : i32
    scf.if %2 {
      %cst_90 = arith.constant 0.000000e+00 : f32
      %142 = vector.broadcast %cst_90 : f32 to vector<6x8x128xf32>
      %c0_91 = arith.constant 0 : index
      %c0_92 = arith.constant 0 : index
      %c0_93 = arith.constant 0 : index
      %c0_94 = arith.constant 0 : index
      %143 = vector.load %arg4[%c0_91, %c0_92, %c0_93, %c0_94] : memref<1x6x8x128xf32, #tpu.memory_space<vmem>>, vector<1x6x8x128xf32>
      %144 = vector.shape_cast %143 : vector<1x6x8x128xf32> to vector<6x8x128xf32>
      %145 = vector.shape_cast %142 : vector<6x8x128xf32> to vector<1x6x8x128xf32>
      tpu.vector_store %arg4[%c0_91, %c0_92, %c0_93, %c0_94], %145 {strides = array<i32>} : memref<1x6x8x128xf32, #tpu.memory_space<vmem>>, vector<1x6x8x128xf32>,
    } else {
    }
    %c0 = arith.constant 0 : index
    %c0_1 = arith.constant 0 : index
    %c0_2 = arith.constant 0 : index
    %3 = vector.load %arg2[%c0, %c0_1, %c0_2] : memref<8x16x128xbf16, #tpu.memory_space<vmem>>, vector<1x16x128xbf16>
    %4 = vector.shape_cast %3 : vector<1x16x128xbf16> to vector<16x128xbf16>
    %5 = arith.extf %4 : vector<16x128xbf16> to vector<16x128xf32>
    %c1 = arith.constant 1 : index
    %c0_3 = arith.constant 0 : index
    %c0_4 = arith.constant 0 : index
    %6 = vector.load %arg2[%c1, %c0_3, %c0_4] : memref<8x16x128xbf16, #tpu.memory_space<vmem>>, vector<1x16x128xbf16>
    %7 = vector.shape_cast %6 : vector<1x16x128xbf16> to vector<16x128xbf16>
    %8 = arith.extf %7 : vector<16x128xbf16> to vector<16x128xf32>
    %c2 = arith.constant 2 : index
    %c0_5 = arith.constant 0 : index
    %c0_6 = arith.constant 0 : index
    %9 = vector.load %arg2[%c2, %c0_5, %c0_6] : memref<8x16x128xbf16, #tpu.memory_space<vmem>>, vector<1x16x128xbf16>
    %10 = vector.shape_cast %9 : vector<1x16x128xbf16> to vector<16x128xbf16>
    %11 = arith.extf %10 : vector<16x128xbf16> to vector<16x128xf32>
    %c3 = arith.constant 3 : index
    %c0_7 = arith.constant 0 : index
    %c0_8 = arith.constant 0 : index
    %12 = vector.load %arg2[%c3, %c0_7, %c0_8] : memref<8x16x128xbf16, #tpu.memory_space<vmem>>, vector<1x16x128xbf16>
    %13 = vector.shape_cast %12 : vector<1x16x128xbf16> to vector<16x128xbf16>
    %14 = arith.extf %13 : vector<16x128xbf16> to vector<16x128xf32>
    %c4 = arith.constant 4 : index
    %c0_9 = arith.constant 0 : index
    %c0_10 = arith.constant 0 : index
    %15 = vector.load %arg2[%c4, %c0_9, %c0_10] : memref<8x16x128xbf16, #tpu.memory_space<vmem>>, vector<1x16x128xbf16>
    %16 = vector.shape_cast %15 : vector<1x16x128xbf16> to vector<16x128xbf16>
    %17 = arith.extf %16 : vector<16x128xbf16> to vector<16x128xf32>
    %c5 = arith.constant 5 : index
    %c0_11 = arith.constant 0 : index
    %c0_12 = arith.constant 0 : index
    %18 = vector.load %arg2[%c5, %c0_11, %c0_12] : memref<8x16x128xbf16, #tpu.memory_space<vmem>>, vector<1x16x128xbf16>
    %19 = vector.shape_cast %18 : vector<1x16x128xbf16> to vector<16x128xbf16>
    %20 = arith.extf %19 : vector<16x128xbf16> to vector<16x128xf32>
    %c6 = arith.constant 6 : index
    %c0_13 = arith.constant 0 : index
    %c0_14 = arith.constant 0 : index
    %21 = vector.load %arg2[%c6, %c0_13, %c0_14] : memref<8x16x128xbf16, #tpu.memory_space<vmem>>, vector<1x16x128xbf16>
    %22 = vector.shape_cast %21 : vector<1x16x128xbf16> to vector<16x128xbf16>
    %23 = arith.extf %22 : vector<16x128xbf16> to vector<16x128xf32>
    %c7 = arith.constant 7 : index
    %c0_15 = arith.constant 0 : index
    %c0_16 = arith.constant 0 : index
    %24 = vector.load %arg2[%c7, %c0_15, %c0_16] : memref<8x16x128xbf16, #tpu.memory_space<vmem>>, vector<1x16x128xbf16>
    %25 = vector.shape_cast %24 : vector<1x16x128xbf16> to vector<16x128xbf16>
    %26 = arith.extf %25 : vector<16x128xbf16> to vector<16x128xf32>
    %c0_17 = arith.constant 0 : index
    %c0_18 = arith.constant 0 : index
    %c0_19 = arith.constant 0 : index
    %27 = vector.load %arg3[%c0_17, %c0_18, %c0_19] : memref<3x16x128xbf16, #tpu.memory_space<vmem>>, vector<1x16x128xbf16>
    %28 = vector.shape_cast %27 : vector<1x16x128xbf16> to vector<16x128xbf16>
    %29 = arith.extf %28 : vector<16x128xbf16> to vector<16x128xf32>
    %c1_20 = arith.constant 1 : index
    %c0_21 = arith.constant 0 : index
    %c0_22 = arith.constant 0 : index
    %30 = vector.load %arg3[%c1_20, %c0_21, %c0_22] : memref<3x16x128xbf16, #tpu.memory_space<vmem>>, vector<1x16x128xbf16>
    %31 = vector.shape_cast %30 : vector<1x16x128xbf16> to vector<16x128xbf16>
    %32 = arith.extf %31 : vector<16x128xbf16> to vector<16x128xf32>
    %c2_23 = arith.constant 2 : index
    %c0_24 = arith.constant 0 : index
    %c0_25 = arith.constant 0 : index
    %33 = vector.load %arg3[%c2_23, %c0_24, %c0_25] : memref<3x16x128xbf16, #tpu.memory_space<vmem>>, vector<1x16x128xbf16>
    %34 = vector.shape_cast %33 : vector<1x16x128xbf16> to vector<16x128xbf16>
    %cst = arith.constant 0.000000e+00 : bf16
    %35 = vector.broadcast %cst : bf16 to vector<16x128xbf16>
    %36 = arith.cmpf ogt, %34, %35 : vector<16x128xbf16>
    %37 = arith.extui %36 : vector<16x128xi1> to vector<16x128xi32>
    %38 = arith.sitofp %37 : vector<16x128xi32> to vector<16x128xf32>
    %cst_26 = arith.constant 0.000000e+00 : bf16
    %39 = vector.broadcast %cst_26 : bf16 to vector<16x128xbf16>
    %40 = arith.cmpf olt, %34, %39 : vector<16x128xbf16>
    %41 = arith.extui %40 : vector<16x128xi1> to vector<16x128xi32>
    %42 = arith.sitofp %41 : vector<16x128xi32> to vector<16x128xf32>
    %43 = arith.addf %17, %23 : vector<16x128xf32>
    %44 = arith.addf %20, %26 : vector<16x128xf32>
    %45 = arith.mulf %43, %44 : vector<16x128xf32>
    %46 = arith.addf %5, %11 : vector<16x128xf32>
    %47 = arith.addf %8, %14 : vector<16x128xf32>
    %48 = arith.mulf %46, %47 : vector<16x128xf32>
    %49 = arith.minimumf %5, %17 : vector<16x128xf32>
    %50 = arith.minimumf %11, %23 : vector<16x128xf32>
    %51 = arith.addf %49, %50 : vector<16x128xf32>
    %52 = arith.minimumf %14, %26 : vector<16x128xf32>
    %53 = arith.minimumf %8, %20 : vector<16x128xf32>
    %54 = arith.addf %52, %53 : vector<16x128xf32>
    %55 = arith.mulf %51, %54 : vector<16x128xf32>
    %56 = arith.addf %45, %48 : vector<16x128xf32>
    %57 = arith.subf %56, %55 : vector<16x128xf32>
    %cst_27 = arith.constant 1.000000e+00 : f32
    %58 = vector.broadcast %cst_27 : f32 to vector<16x128xf32>
    %59 = arith.addf %55, %58 : vector<16x128xf32>
    %cst_28 = arith.constant 1.000000e+00 : f32
    %60 = vector.broadcast %cst_28 : f32 to vector<16x128xf32>
    %61 = arith.addf %57, %60 : vector<16x128xf32>
    %62 = arith.divf %59, %61 : vector<16x128xf32>
    %cst_29 = arith.constant 0.000000e+00 : f32
    %63 = vector.broadcast %cst_29 : f32 to vector<16x128xf32>
    %64 = arith.cmpf ogt, %38, %63 : vector<16x128xf32>
    %cst_30 = arith.constant 1.000000e+00 : f32
    %65 = vector.broadcast %cst_30 : f32 to vector<16x128xf32>
    %66 = arith.select %64, %62, %65 : vector<16x128xi1>, vector<16x128xf32>
    %67 = math.log %66 : vector<16x128xf32>
    %cst_31 = arith.constant 0.000000e+00 : f32
    %68 = vector.broadcast %cst_31 : f32 to vector<16x128xf32>
    %69 = arith.subf %68, %67 : vector<16x128xf32>
    %70 = arith.mulf %69, %38 : vector<16x128xf32>
    %cst_32 = arith.constant 0.000000e+00 : f32
    %71 = vector.broadcast %cst_32 : f32 to vector<16x128xf32>
    %72 = arith.maximumf %29, %71 : vector<16x128xf32>
    %73 = math.absf %29 : vector<16x128xf32>
    %cst_33 = arith.constant 0.000000e+00 : f32
    %74 = vector.broadcast %cst_33 : f32 to vector<16x128xf32>
    %75 = arith.subf %74, %73 : vector<16x128xf32>
    %76 = math.exp %75 : vector<16x128xf32>
    %77 = math.log1p %76 : vector<16x128xf32>
    %78 = arith.addf %72, %77 : vector<16x128xf32>
    %79 = arith.subf %78, %29 : vector<16x128xf32>
    %80 = arith.mulf %79, %38 : vector<16x128xf32>
    %81 = arith.mulf %78, %42 : vector<16x128xf32>
    %cst_34 = arith.constant 0.000000e+00 : f32
    %82 = vector.broadcast %cst_34 : f32 to vector<16x128xf32>
    %83 = arith.maximumf %32, %82 : vector<16x128xf32>
    %84 = arith.mulf %62, %38 : vector<16x128xf32>
    %85 = arith.mulf %32, %84 : vector<16x128xf32>
    %86 = arith.subf %83, %85 : vector<16x128xf32>
    %87 = math.absf %32 : vector<16x128xf32>
    %cst_35 = arith.constant 0.000000e+00 : f32
    %88 = vector.broadcast %cst_35 : f32 to vector<16x128xf32>
    %89 = arith.subf %88, %87 : vector<16x128xf32>
    %90 = math.exp %89 : vector<16x128xf32>
    %91 = math.log1p %90 : vector<16x128xf32>
    %92 = arith.addf %86, %91 : vector<16x128xf32>
    %93 = arith.mulf %92, %38 : vector<16x128xf32>
    %c0_36 = arith.constant 0 : index
    %c0_37 = arith.constant 0 : index
    %c0_38 = arith.constant 0 : index
    %c0_39 = arith.constant 0 : index
    %94 = vector.load %arg4[%c0_36, %c0_37, %c0_38, %c0_39] : memref<1x6x8x128xf32, #tpu.memory_space<vmem>>, vector<1x1x8x128xf32>
    %95 = vector.shape_cast %94 : vector<1x1x8x128xf32> to vector<8x128xf32>
    %96 = vector.shape_cast %38 : vector<16x128xf32> to vector<2x8x128xf32>
    %cst_40 = arith.constant dense<0.000000e+00> : vector<8x128xf32>
    %97 = vector.multi_reduction <add>, %96, %cst_40 [0] : vector<2x8x128xf32> to vector<8x128xf32>
    %98 = arith.addf %95, %97 : vector<8x128xf32>
    %c0_41 = arith.constant 0 : index
    %c0_42 = arith.constant 0 : index
    %c0_43 = arith.constant 0 : index
    %c0_44 = arith.constant 0 : index
    %99 = vector.load %arg4[%c0_41, %c0_42, %c0_43, %c0_44] : memref<1x6x8x128xf32, #tpu.memory_space<vmem>>, vector<1x1x8x128xf32>
    %100 = vector.shape_cast %99 : vector<1x1x8x128xf32> to vector<8x128xf32>
    %101 = vector.shape_cast %98 : vector<8x128xf32> to vector<1x1x8x128xf32>
    tpu.vector_store %arg4[%c0_41, %c0_42, %c0_43, %c0_44], %101 {strides = array<i32>} : memref<1x6x8x128xf32, #tpu.memory_space<vmem>>, vector<1x1x8x128xf32>,
    %c0_45 = arith.constant 0 : index
    %c1_46 = arith.constant 1 : index
    %c0_47 = arith.constant 0 : index
    %c0_48 = arith.constant 0 : index
    %102 = vector.load %arg4[%c0_45, %c1_46, %c0_47, %c0_48] : memref<1x6x8x128xf32, #tpu.memory_space<vmem>>, vector<1x1x8x128xf32>
    %103 = vector.shape_cast %102 : vector<1x1x8x128xf32> to vector<8x128xf32>
    %104 = vector.shape_cast %42 : vector<16x128xf32> to vector<2x8x128xf32>
    %cst_49 = arith.constant dense<0.000000e+00> : vector<8x128xf32>
    %105 = vector.multi_reduction <add>, %104, %cst_49 [0] : vector<2x8x128xf32> to vector<8x128xf32>
    %106 = arith.addf %103, %105 : vector<8x128xf32>
    %c0_50 = arith.constant 0 : index
    %c1_51 = arith.constant 1 : index
    %c0_52 = arith.constant 0 : index
    %c0_53 = arith.constant 0 : index
    %107 = vector.load %arg4[%c0_50, %c1_51, %c0_52, %c0_53] : memref<1x6x8x128xf32, #tpu.memory_space<vmem>>, vector<1x1x8x128xf32>
    %108 = vector.shape_cast %107 : vector<1x1x8x128xf32> to vector<8x128xf32>
    %109 = vector.shape_cast %106 : vector<8x128xf32> to vector<1x1x8x128xf32>
    tpu.vector_store %arg4[%c0_50, %c1_51, %c0_52, %c0_53], %109 {strides = array<i32>} : memref<1x6x8x128xf32, #tpu.memory_space<vmem>>, vector<1x1x8x128xf32>,
    %c0_54 = arith.constant 0 : index
    %c2_55 = arith.constant 2 : index
    %c0_56 = arith.constant 0 : index
    %c0_57 = arith.constant 0 : index
    %110 = vector.load %arg4[%c0_54, %c2_55, %c0_56, %c0_57] : memref<1x6x8x128xf32, #tpu.memory_space<vmem>>, vector<1x1x8x128xf32>
    %111 = vector.shape_cast %110 : vector<1x1x8x128xf32> to vector<8x128xf32>
    %112 = vector.shape_cast %70 : vector<16x128xf32> to vector<2x8x128xf32>
    %cst_58 = arith.constant dense<0.000000e+00> : vector<8x128xf32>
    %113 = vector.multi_reduction <add>, %112, %cst_58 [0] : vector<2x8x128xf32> to vector<8x128xf32>
    %114 = arith.addf %111, %113 : vector<8x128xf32>
    %c0_59 = arith.constant 0 : index
    %c2_60 = arith.constant 2 : index
    %c0_61 = arith.constant 0 : index
    %c0_62 = arith.constant 0 : index
    %115 = vector.load %arg4[%c0_59, %c2_60, %c0_61, %c0_62] : memref<1x6x8x128xf32, #tpu.memory_space<vmem>>, vector<1x1x8x128xf32>
    %116 = vector.shape_cast %115 : vector<1x1x8x128xf32> to vector<8x128xf32>
    %117 = vector.shape_cast %114 : vector<8x128xf32> to vector<1x1x8x128xf32>
    tpu.vector_store %arg4[%c0_59, %c2_60, %c0_61, %c0_62], %117 {strides = array<i32>} : memref<1x6x8x128xf32, #tpu.memory_space<vmem>>, vector<1x1x8x128xf32>,
    %c0_63 = arith.constant 0 : index
    %c3_64 = arith.constant 3 : index
    %c0_65 = arith.constant 0 : index
    %c0_66 = arith.constant 0 : index
    %118 = vector.load %arg4[%c0_63, %c3_64, %c0_65, %c0_66] : memref<1x6x8x128xf32, #tpu.memory_space<vmem>>, vector<1x1x8x128xf32>
    %119 = vector.shape_cast %118 : vector<1x1x8x128xf32> to vector<8x128xf32>
    %120 = vector.shape_cast %80 : vector<16x128xf32> to vector<2x8x128xf32>
    %cst_67 = arith.constant dense<0.000000e+00> : vector<8x128xf32>
    %121 = vector.multi_reduction <add>, %120, %cst_67 [0] : vector<2x8x128xf32> to vector<8x128xf32>
    %122 = arith.addf %119, %121 : vector<8x128xf32>
    %c0_68 = arith.constant 0 : index
    %c3_69 = arith.constant 3 : index
    %c0_70 = arith.constant 0 : index
    %c0_71 = arith.constant 0 : index
    %123 = vector.load %arg4[%c0_68, %c3_69, %c0_70, %c0_71] : memref<1x6x8x128xf32, #tpu.memory_space<vmem>>, vector<1x1x8x128xf32>
    %124 = vector.shape_cast %123 : vector<1x1x8x128xf32> to vector<8x128xf32>
    %125 = vector.shape_cast %122 : vector<8x128xf32> to vector<1x1x8x128xf32>
    tpu.vector_store %arg4[%c0_68, %c3_69, %c0_70, %c0_71], %125 {strides = array<i32>} : memref<1x6x8x128xf32, #tpu.memory_space<vmem>>, vector<1x1x8x128xf32>,
    %c0_72 = arith.constant 0 : index
    %c4_73 = arith.constant 4 : index
    %c0_74 = arith.constant 0 : index
    %c0_75 = arith.constant 0 : index
    %126 = vector.load %arg4[%c0_72, %c4_73, %c0_74, %c0_75] : memref<1x6x8x128xf32, #tpu.memory_space<vmem>>, vector<1x1x8x128xf32>
    %127 = vector.shape_cast %126 : vector<1x1x8x128xf32> to vector<8x128xf32>
    %128 = vector.shape_cast %81 : vector<16x128xf32> to vector<2x8x128xf32>
    %cst_76 = arith.constant dense<0.000000e+00> : vector<8x128xf32>
    %129 = vector.multi_reduction <add>, %128, %cst_76 [0] : vector<2x8x128xf32> to vector<8x128xf32>
    %130 = arith.addf %127, %129 : vector<8x128xf32>
    %c0_77 = arith.constant 0 : index
    %c4_78 = arith.constant 4 : index
    %c0_79 = arith.constant 0 : index
    %c0_80 = arith.constant 0 : index
    %131 = vector.load %arg4[%c0_77, %c4_78, %c0_79, %c0_80] : memref<1x6x8x128xf32, #tpu.memory_space<vmem>>, vector<1x1x8x128xf32>
    %132 = vector.shape_cast %131 : vector<1x1x8x128xf32> to vector<8x128xf32>
    %133 = vector.shape_cast %130 : vector<8x128xf32> to vector<1x1x8x128xf32>
    tpu.vector_store %arg4[%c0_77, %c4_78, %c0_79, %c0_80], %133 {strides = array<i32>} : memref<1x6x8x128xf32, #tpu.memory_space<vmem>>, vector<1x1x8x128xf32>,
    %c0_81 = arith.constant 0 : index
    %c5_82 = arith.constant 5 : index
    %c0_83 = arith.constant 0 : index
    %c0_84 = arith.constant 0 : index
    %134 = vector.load %arg4[%c0_81, %c5_82, %c0_83, %c0_84] : memref<1x6x8x128xf32, #tpu.memory_space<vmem>>, vector<1x1x8x128xf32>
    %135 = vector.shape_cast %134 : vector<1x1x8x128xf32> to vector<8x128xf32>
    %136 = vector.shape_cast %93 : vector<16x128xf32> to vector<2x8x128xf32>
    %cst_85 = arith.constant dense<0.000000e+00> : vector<8x128xf32>
    %137 = vector.multi_reduction <add>, %136, %cst_85 [0] : vector<2x8x128xf32> to vector<8x128xf32>
    %138 = arith.addf %135, %137 : vector<8x128xf32>
    %c0_86 = arith.constant 0 : index
    %c5_87 = arith.constant 5 : index
    %c0_88 = arith.constant 0 : index
    %c0_89 = arith.constant 0 : index
    %139 = vector.load %arg4[%c0_86, %c5_87, %c0_88, %c0_89] : memref<1x6x8x128xf32, #tpu.memory_space<vmem>>, vector<1x1x8x128xf32>
    %140 = vector.shape_cast %139 : vector<1x1x8x128xf32> to vector<8x128xf32>
    %141 = vector.shape_cast %138 : vector<8x128xf32> to vector<1x1x8x128xf32>
    tpu.vector_store %arg4[%c0_86, %c5_87, %c0_88, %c0_89], %141 {strides = array<i32>} : memref<1x6x8x128xf32, #tpu.memory_space<vmem>>, vector<1x1x8x128xf32>,
    return
  }
  func.func @transform_0(%arg0: i32, %arg1: i32) -> (i32, i32, i32) {
    %c2_i32 = arith.constant 2 : i32
    %0 = arith.muli %arg0, %c2_i32 : i32
    %1 = arith.addi %0, %arg1 : i32
    %c0_i32 = arith.constant 0 : i32
    %c0_i32_0 = arith.constant 0 : i32
    %c0_i32_1 = arith.constant 0 : i32
    return %c0_i32, %1, %c0_i32_0 : i32, i32, i32
  }
  func.func @transform_1(%arg0: i32, %arg1: i32) -> (i32, i32, i32) {
    %c2_i32 = arith.constant 2 : i32
    %0 = arith.muli %arg0, %c2_i32 : i32
    %1 = arith.addi %0, %arg1 : i32
    %c0_i32 = arith.constant 0 : i32
    %c0_i32_0 = arith.constant 0 : i32
    %c0_i32_1 = arith.constant 0 : i32
    return %c0_i32, %1, %c0_i32_0 : i32, i32, i32
  }
  func.func @transform_2(%arg0: i32, %arg1: i32) -> (i32, i32, i32, i32) {
    %c0_i32 = arith.constant 0 : i32
    %c0_i32_0 = arith.constant 0 : i32
    %c0_i32_1 = arith.constant 0 : i32
    %c0_i32_2 = arith.constant 0 : i32
    return %arg0, %c0_i32, %c0_i32_0, %c0_i32_1 : i32, i32, i32, i32
  }
}

</mosaic_0001>

<bundles_post_ra>
// kernel: dag_forward_losses.1
= control target key start
LH: loop header
LB: loop body
LE: loop exit
PB: predicated region body
PF: predicated region fallthrough
CT: control target
= control target key end

     0   :  { %s956_s9 = smov 0   ;;  %s958_s10 = smov 0   ;;  %s1169_s0 = inlined_call_operand.vmem [shape: bf16[8,64,128], index: 0, kind: input, shape index: {}]   ;;  %s1170_s1 = inlined_call_operand.vmem [shape: bf16[3,64,128], index: 1, kind: input, shape index: {}]   ;;  %s1171_s2 = inlined_call_operand.vmem [shape: f32[2,6,8,128], index: 2, kind: output, shape index: {}]  }
   0x1   :  { %s960_s11 = smov 0   ;;  %s962_s12 = smov 0  }
   0x2   :  { %s964_s13 = smov 0   ;;  %s966_s14 = smov 0  }
   0x3   :  { %s968_s15 = smov 0  }
   0x4 LB: > { %s21_s16 = sadd.s32 1, %s928_s13  ;;  %s24_s17 = sadd.s32 1, %s932_s14  ;;  %s936_s15 = sphi %s968_s15, %s12_s15   ;;  %s932_s14 = sphi %s966_s14, %s1186_s14   ;;  %s928_s13 = sphi %s964_s13, %s1185_s13   ;;  %s924_s12 = sphi %s962_s12, %s1184_s12   ;;  %s920_s11 = sphi %s960_s11, %s1183_s11   ;;  %s916_s10 = sphi %s958_s10, %s1182_s10   ;;  %s912_s9 = sphi %s956_s9, %s1181_s9  }
   0x5   : > { %p22_p0 = scmp.ge.s32.totalorder %s21_s16, 2  ;;  %p42_p1 = scmp.ne.s32.totalorder %s916_s10, %s912_s9 }
   0x6   : > { %p43_p2 = scmp.eq.s32.totalorder %s936_s15, 0  ;;  %s695_s18 = sshll.u32 %s932_s14, 1 }
   0x7   : > { %s1188_s16 = smov (%p22_p0, %s21_s16), 0  ;;  %s1190_s17 = smov (!%p22_p0, %s24_s17), %s932_s14 }
   0x8   : > { %p26_p3 = scmp.ge.s32.totalorder %s1190_s17, 2  ;;  %p1000_p4 = por %p43_p2, %p42_p1 }
   0x9   : > { %s1007_s20 = sadd.s32 %s928_s13, %s695_s18  ;;  %s35_s24 = sadd.s32 1, %s916_s10 }
   0xa   : > { %s1192_s17 = smov (%p26_p3, %s1190_s17), 0  ;;  %p700_p6 = scmp.ge.s32.totalorder %s936_s15, 4 }
   0xb   : > { %s696_s21 = sshll.u32 %s1192_s17, 1 }
   0xc   : > { %s31_s22 = sadd.s32 %s696_s21, %s1188_s16  ;;  %124 = sbr.rel (%p700_p6) target bundleno = 38 (0x26), region = 16 }
   0xd   : > { %s32_s23 = ssub.s32 %s1007_s20, %s31_s22 }
   0xe   : > { %p33_p5 = scmp.eq.s32.totalorder %s32_s23, 0 }
  0x10   : > { %s1014_s25 = scalar_select %p33_p5, %s916_s10, %s35_s24  }
  0x13   : > { %127 = sbr.rel (!%p1000_p4) target bundleno = 31 (0x1f), region = 20  ;;  %s129_s26 = sand.u32 (%p1000_p4), 1, %s916_s10  }
  0x14   : > { %s746_s27 = sshll.u32 (%p1000_p4), %s1007_s20, 3  ;;  %s701_s28 = sshll.u32 (%p1000_p4), %s129_s26, 6 }
  0x15   : > { %s136_s3 = scalar_lea.vmem (%p1000_p4), %s1169_s0, %s746_s27  ;;  %s131_s4 = scalar_lea.vmem (%p1000_p4), [#allocation2], %s701_s28 }
  0x16   : > { %v152_v0 = vld [vmem:[%s136_s3] sm:$0xff] (%p1000_p4)  }
  0x17   : > { %v156_v1 = vld [vmem:[%s136_s3 + $0x20] sm:$0xff] (%p1000_p4)   ;;  %153 = vst [vmem:[%s131_s4] sm:$0xff] (%p1000_p4), %v152_v0  }
  0x18   : > { %v160_v2 = vld [vmem:[%s136_s3 + $0x40] sm:$0xff] (%p1000_p4)   ;;  %157 = vst [vmem:[%s131_s4 + $0x8] sm:$0xff] (%p1000_p4), %v156_v1  }
  0x19   : > { %161 = vst [vmem:[%s131_s4 + $0x10] sm:$0xff] (%p1000_p4), %v160_v2   ;;  %v164_v3 = vld [vmem:[%s136_s3 + $0x60] sm:$0xff] (%p1000_p4)  }
  0x1a   : > { %v168_v4 = vld [vmem:[%s136_s3 + $0x80] sm:$0xff]   ;;  %165 = vst [vmem:[%s131_s4 + $0x18] sm:$0xff] %v164_v3  }
  0x1b   : > { %v172_v5 = vld [vmem:[%s136_s3 + $0xa0] sm:$0xff]   ;;  %169 = vst [vmem:[%s131_s4 + $0x20] sm:$0xff] %v168_v4  }
  0x1c   : > { %173 = vst [vmem:[%s131_s4 + $0x28] sm:$0xff] %v172_v5   ;;  %v176_v6 = vld [vmem:[%s136_s3 + $0xc0] sm:$0xff]  }
  0x1d   : > { %v180_v7 = vld [vmem:[%s136_s3 + $0xe0] sm:$0xff]   ;;  %177 = vst [vmem:[%s131_s4 + $0x30] sm:$0xff] %v176_v6  }
  0x1e   : > { %181 = vst [vmem:[%s131_s4 + $0x38] sm:$0xff] %v180_v7  }
  0x1f PF: > { %238 = sbr.rel (!%p1000_p4) target bundleno = 38 (0x26), region = 61  ;;  %s240_s5 = sand.u32 (%p1000_p4), 1, %s916_s10  }
  0x20   : > { %s747_s6 = sshll.u32 (%p1000_p4), %s1007_s20, 3  ;;  %s796_s7 = smul.u32 (%p1000_p4), 24, %s240_s5 }
  0x21   : > { %s247_s21 = scalar_lea.vmem (%p1000_p4), %s1170_s1, %s747_s6 }
  0x22   : > { %v263_v8 = vld [vmem:[%s247_s21] sm:$0xff] (%p1000_p4)   ;;  %s242_s22 = scalar_lea.vmem (%p1000_p4), [#allocation3], %s796_s7 }
  0x23   : > { %v267_v9 = vld [vmem:[%s247_s21 + $0x20] sm:$0xff] (%p1000_p4)   ;;  %264 = vst [vmem:[%s242_s22] sm:$0xff] (%p1000_p4), %v263_v8  }
  0x24   : > { %v271_v10 = vld [vmem:[%s247_s21 + $0x40] sm:$0xff] (%p1000_p4)   ;;  %268 = vst [vmem:[%s242_s22 + $0x8] sm:$0xff] (%p1000_p4), %v267_v9  }
  0x25   : > { %272 = vst [vmem:[%s242_s22 + $0x10] sm:$0xff] (%p1000_p4), %v271_v10  }
  0x26 PF: > { %p708_p7 = scmp.ge.s32.totalorder %s936_s15, 1  ;;  %p308_p8 = scmp.lt.s32.totalorder %s936_s15, 5 }
  0x28   : > { %p309_p9 = pnand %p708_p7, %p308_p8 }
  0x29   : > { %s315_s19 = sand.u32 (!%p309_p9), 1, %s912_s9   ;;  %p353_p10 = scmp.lt.s32.totalorder (!%p309_p9), %s924_s12, 1 }
  0x2a   : > { %312 = sbr.rel (%p309_p9) target bundleno = 125 (0x7d), region = 102  ;;  %s709_s20 = sshll.u32 (!%p309_p9), %s315_s19, 6 }
  0x2b   : > { %s797_s23 = smul.u32 (!%p309_p9), 24, %s315_s19  ;;  %s1041_s29 = scalar_lea.vmem (!%p309_p9), [#allocation2], %s709_s20 }
  0x2c   : > { %p711_p11 = scmp.ne.s32.totalorder (!%p309_p9), %s920_s11, 0 }
  0x2d   : > { %s1043_s30 = scalar_lea.vmem (!%p309_p9), [#allocation3], %s797_s23 }
  0x31   : > { %s1194_s12 = smov (!%p353_p10, %s924_s12), 1  ;;  %364 = sbr.rel (%p711_p11) target bundleno = 56 (0x38), region = 114 }
  0x32   : > { %s798_s24 = smul.u32 48, %s1194_s12  ;;  %v938_v11 = vmov (!%p711_p11), 0.0  }
  0x34   : > { %s1039_s28 = scalar_lea.vmem %s1171_s2, %s798_s24 }
  0x35   : > { %365 = vst [vmem:[%s1039_s28] sm:$0xff] (!%p711_p11), %v938_v11  ;;  %366 = vst [vmem:[%s1039_s28 + $0x8] sm:$0xff] (!%p711_p11), %v938_v11 }
  0x36   : > { %367 = vst [vmem:[%s1039_s28 + $0x10] sm:$0xff] (!%p711_p11), %v938_v11  ;;  %368 = vst [vmem:[%s1039_s28 + $0x18] sm:$0xff] (!%p711_p11), %v938_v11 }
  0x37   : > { %369 = vst [vmem:[%s1039_s28 + $0x20] sm:$0xff] (!%p711_p11), %v938_v11  ;;  %370 = vst [vmem:[%s1039_s28 + $0x28] sm:$0xff] (!%p711_p11), %v938_v11 }
  0x38 PF: > { %v728_v12 = vld [vmem:[%s1043_s30 + $0x10] sm:$0xf]  ;;  %v729_v13 = vld [vmem:[%s1043_s30 + $0x14] sm:$0xf]  ;;  %v939_v14 = vmov 0   ;;  %v749_v19 = vld [vmem:[%s1041_s29] sm:$0xff]  }
  0x39   : > { %vm422_vm0 = vcmp.gt.bf16.partialorder %v728_v12, 0  ;;  %vm423_vm1 = vcmp.gt.bf16.partialorder %v729_v13, 0  ;;  %vm434_vm2 = vcmp.lt.bf16.partialorder %v728_v12, 0  ;;  %vm435_vm3 = vcmp.lt.bf16.partialorder %v729_v13, 0  ;;  %v1056_v20 = vld [vmem:[%s1041_s29 + $0x8] sm:$0xff]   ;;  %v789_v30 = vld [vmem:[%s1041_s29 + $0x10] sm:$0xff]  }
  0x3a   : > { %v424_v15 = vsel %vm422_vm0, 65537, %v939_v14  ;;  %v425_v16 = vsel %vm423_vm1, 65537, %v939_v14  ;;  %v436_v17 = vsel %vm434_vm2, 65537, %v939_v14  ;;  %v437_v18 = vsel %vm435_vm3, 65537, %v939_v14  ;;  %v790_v31 = vld [vmem:[%s1041_s29 + $0x18] sm:$0xff]   ;;  %v791_v32 = vld [vmem:[%s1041_s29 + $0x20] sm:$0xff]  }
  0x3b   : > { %v426_v21 = vunpack.c.l.b16 %v424_v15  ;;  %v427_v22 = vunpack.c.l.b16 %v425_v16  ;;  %v438_v23 = vunpack.c.l.b16 %v436_v17  ;;  %v439_v24 = vunpack.c.l.b16 %v437_v18  ;;  %v792_v39 = vld [vmem:[%s1041_s29 + $0x28] sm:$0xff]   ;;  %v793_v44 = vld [vmem:[%s1041_s29 + $0x30] sm:$0xff]   ;;  %v794_v45 = vld [vmem:[%s1041_s29 + $0x38] sm:$0xff]  }
  0x3c   : > { %v570_v25 = vld [vmem:[%s1039_s28] sm:$0xff]  ;;  %v750_v26 = vunpack.c.l.bf16 %v749_v19  ;;  %v751_v27 = vunpack.c.h.bf16 %v749_v19  ;;  %v754_v28 = vunpack.c.l.bf16 %v1056_v20  ;;  %v755_v29 = vunpack.c.h.bf16 %v1056_v20  ;;  %v734_v38 = vld [vmem:[%s1039_s28 + $0x8] sm:$0xff] }
  0x3d   : > { %vm428_vm4 = vcmp.ne.s32.totalorder %v426_v21, 0  ;;  %vm429_vm5 = vcmp.ne.s32.totalorder %v427_v22, 0  ;;  %vm440_vm6 = vcmp.ne.s32.totalorder %v438_v23, 0  ;;  %vm441_vm7 = vcmp.ne.s32.totalorder %v439_v24, 0  ;;  %v781_v14 = vld [vmem:[%s1043_s30] sm:$0xff]   ;;  %v795_v17 = vld [vmem:[%s1043_s30 + $0x8] sm:$0xff]  }
  0x3e   : > { %v940_v33 = vmov 0.0   ;;  %v758_v42 = vunpack.c.l.bf16 %v789_v30  ;;  %v759_v43 = vunpack.c.h.bf16 %v789_v30  ;;  %v762_v46 = vunpack.c.l.bf16 %v790_v31 }
  0x3f   : > { %v1064_v34 = vsel %vm428_vm4, 1.0, %v940_v33  ;;  %v1066_v35 = vsel %vm429_vm5, 1.0, %v940_v33  ;;  %v1068_v36 = vsel %vm440_vm6, 1.0, %v940_v33  ;;  %v1070_v37 = vsel %vm441_vm7, 1.0, %v940_v33 }
  0x40   : > { %v571_v40 = vadd.f32 %v1066_v35, %v1064_v34  ;;  %v576_v41 = vadd.f32 %v1070_v37, %v1068_v36  ;;  %v763_v47 = vunpack.c.h.bf16 %v790_v31  ;;  %v766_v48 = vunpack.c.l.bf16 %v791_v32 }
  0x41   : > { %v767_v49 = vunpack.c.h.bf16 %v791_v32  ;;  %v770_v52 = vunpack.c.l.bf16 %v792_v39  ;;  %v771_v53 = vunpack.c.h.bf16 %v792_v39  ;;  %v774_v54 = vunpack.c.l.bf16 %v793_v44 }
  0x42   : > { %v572_v50 = vadd.f32 %v571_v40, %v570_v25  ;;  %v577_v51 = vadd.f32 %v734_v38, %v576_v41  ;;  %v775_v55 = vunpack.c.h.bf16 %v793_v44  ;;  %v778_v56 = vunpack.c.l.bf16 %v794_v45 }
  0x43   : > { %v779_v57 = vunpack.c.h.bf16 %v794_v45  ;;  %v452_v58 = vadd.f32 %v758_v42, %v750_v26  ;;  %v453_v59 = vadd.f32 %v759_v43, %v751_v27  ;;  %v454_v60 = vadd.f32 %v762_v46, %v754_v28 }
  0x44   : > { %573 = vst [vmem:[%s1039_s28] sm:$0xff] %v572_v50  ;;  %735 = vst [vmem:[%s1039_s28 + $0x8] sm:$0xff] %v577_v51  ;;  %v455_v61 = vadd.f32 %v763_v47, %v755_v29  ;;  %v446_v62 = vadd.f32 %v774_v54, %v766_v48  ;;  %v447_v63 = vadd.f32 %v775_v55, %v767_v49  ;;  %v1084_v22 = vunpack.c.l.bf16 %v781_v14 }
  0x45   : > { %v448_v0 = vadd.f32 %v778_v56, %v770_v52  ;;  %v449_v1 = vadd.f32 %v779_v57, %v771_v53  ;;  %v456_v2 = vmul.f32 %v454_v60, %v452_v58  ;;  %v458_v4 = vmin.f32 %v750_v26, %v766_v48 }
  0x46   : > { %v457_v3 = vmul.f32 %v455_v61, %v453_v59  ;;  %v459_v5 = vmin.f32 %v751_v27, %v767_v49  ;;  %v460_v8 = vmin.f32 %v758_v42, %v774_v54  ;;  %v461_v9 = vmin.f32 %v759_v43, %v775_v55 }
  0x47   : > { %v450_v6 = vmul.f32 %v448_v0, %v446_v62  ;;  %v451_v7 = vmul.f32 %v449_v1, %v447_v63  ;;  %v464_v10 = vmin.f32 %v762_v46, %v778_v56  ;;  %v465_v11 = vmin.f32 %v763_v47, %v779_v57 }
  0x48   : > { %v466_v12 = vmin.f32 %v754_v28, %v770_v52  ;;  %v467_v13 = vmin.f32 %v755_v29, %v771_v53  ;;  %v462_v15 = vadd.f32 %v460_v8, %v458_v4  ;;  %v463_v16 = vadd.f32 %v461_v9, %v459_v5 }
  0x49   : > { %v472_v20 = vadd.f32 %v456_v2, %v450_v6  ;;  %v473_v21 = vadd.f32 %v457_v3, %v451_v7  ;;  %v1086_v23 = vunpack.c.h.bf16 %v781_v14  ;;  %v1088_v26 = vunpack.c.l.bf16 %v795_v17 }
  0x4a   : > { %v468_v18 = vadd.f32 %v466_v12, %v464_v10  ;;  %v469_v19 = vadd.f32 %v467_v13, %v465_v11  ;;  %v1090_v27 = vunpack.c.h.bf16 %v795_v17  ;;  %v498_v28 = vand.u32 2147483647, %v1084_v22 }
  0x4b   : > { %v499_v29 = vand.u32 2147483647, %v1086_v23  ;;  %v540_v40 = vand.u32 2147483647, %v1088_v26  ;;  %vm484_vm8 = vcmp.gt.f32.partialorder %v1064_v34, 0.0  ;;  %vm485_vm9 = vcmp.gt.f32.partialorder %v1066_v35, 0.0 }
  0x4c   : > { %v470_v24 = vmul.f32 %v468_v18, %v462_v15  ;;  %v471_v25 = vmul.f32 %v469_v19, %v463_v16  ;;  %v500_v32 = vsub.f32 0.0, %v498_v28  ;;  %v541_v41 = vand.u32 2147483647, %v1090_v27 }
  0x4d   : > { %v501_v33 = vsub.f32 0.0, %v499_v29  ;;  %v542_v44 = vsub.f32 0.0, %v540_v40  ;;  %v496_v9 = vmax.f32 %v1084_v22, 0.0  ;;  %v497_v10 = vmax.f32 %v1086_v23, 0.0 }
  0x4e   : > { %v474_v30 = vsub.f32 %v472_v20, %v470_v24  ;;  %v475_v31 = vsub.f32 %v473_v21, %v471_v25  ;;  %v502_v42 = vmul.f32 1.442695, %v500_v32  ;;  %v543_v45 = vsub.f32 0.0, %v541_v41 }
  0x4f   : > { %v504_v43 = vmul.f32 1.442695, %v501_v33  ;;  %v544_v46 = vmul.f32 1.442695, %v542_v44  ;;  %v476_v48 = vadd.f32 1.0, %v470_v24  ;;  %v477_v49 = vadd.f32 1.0, %v471_v25 }
  0x50   : > { %v478_v38 = vadd.f32 1.0, %v474_v30  ;;  %v479_v39 = vadd.f32 1.0, %v475_v31  ;;  %v546_v47 = vmul.f32 1.442695, %v543_v45  ;;  %v532_v14 = vmax.f32 %v1088_v26, 0.0 }
  0x51   : > { %v533_v15 = vmax.f32 %v1090_v27, 0.0 }
  0x52   : > { %858 = vrcp.f32 %v478_v38 }
  0x53   : > { %860 = vrcp.f32 %v479_v39 }
  0x54   : > { %862 = vpow2.f32 %v502_v42 }
  0x55   : > { %864 = vpow2.f32 %v504_v43 }
  0x56   : > { %866 = vpow2.f32 %v544_v46 }
  0x57   : > { %868 = vpow2.f32 %v546_v47 }
  0x5c   : > { %v859_v50 = vpop.eup %858 }
  0x5d   : > { %v861_v51 = vpop.eup %860  ;;  %v481_v52 = vmul.f32 %v859_v50, %v476_v48 }
  0x5e   : > { %v863_v53 = vpop.eup %862  ;;  %v483_v54 = vmul.f32 %v861_v51, %v477_v49  ;;  %v736_v51 = vld [vmem:[%s1039_s28 + $0x10] sm:$0xff] }
  0x5f   : > { %v865_v55 = vpop.eup %864  ;;  %v486_v56 = vsel %vm484_vm8, %v481_v52, 1.0  ;;  %v506_v57 = vadd.f32 1.0, %v863_v53  ;;  %v509_v62 = vmul.f32 -0.5, %v863_v53  ;;  %v512_v2 = vand.u32 2147483647, %v863_v53 }
  0x60   : > { %v867_v58 = vpop.eup %866  ;;  %v487_v59 = vsel %vm485_vm9, %v483_v54, 1.0  ;;  %870 = vlog2.f32 %v486_v56  ;;  %v515_v60 = vadd.f32 1.0, %v865_v55  ;;  %v518_v0 = vmul.f32 -0.5, %v865_v55 }
  0x61   : > { %872 = vlog2.f32 %v487_v59  ;;  %v869_v61 = vpop.eup %868  ;;  %v548_v63 = vadd.f32 1.0, %v867_v58  ;;  %v551_v3 = vmul.f32 -0.5, %v867_v58  ;;  %v510_v4 = vadd.f32 1.0, %v509_v62 }
  0x62   : > { %874 = vlog2.f32 %v506_v57  ;;  %v557_v1 = vadd.f32 1.0, %v869_v61  ;;  %v534_v5 = vmul.f32 %v1064_v34, %v481_v52  ;;  %v519_v6 = vadd.f32 1.0, %v518_v0 }
  0x63   : > { %876 = vlog2.f32 %v515_v60  ;;  %v521_v7 = vand.u32 2147483647, %v865_v55  ;;  %v535_v8 = vmul.f32 %v1066_v35, %v483_v54  ;;  %v560_v11 = vmul.f32 -0.5, %v869_v61 }
  0x64   : > { %878 = vlog2.f32 %v548_v63  ;;  %vm1102_vm10 = vcmp.lt.f32.partialorder %v512_v2, 0.0004427343  ;;  %v552_v16 = vadd.f32 1.0, %v551_v3  ;;  %v511_v19 = vmul.f32 %v863_v53, %v510_v4  ;;  %v740_v2 = vld [vmem:[%s1039_s28 + $0x20] sm:$0xff] }
  0x65   : > { %880 = vlog2.f32 %v557_v1  ;;  %v536_v20 = vmul.f32 %v1088_v26, %v534_v5  ;;  %v554_v21 = vand.u32 2147483647, %v867_v58  ;;  %v520_v28 = vmul.f32 %v865_v55, %v519_v6 }
  0x66   : > { %vm1109_vm11 = vcmp.lt.f32.partialorder %v521_v7, 0.0004427343  ;;  %v537_v30 = vmul.f32 %v1090_v27, %v535_v8  ;;  %v561_v38 = vadd.f32 1.0, %v560_v11  ;;  %v563_v39 = vand.u32 2147483647, %v869_v61 }
  0x67   : > { %v553_v42 = vmul.f32 %v867_v58, %v552_v16  ;;  %v538_v45 = vsub.f32 %v532_v14, %v536_v20  ;;  %vm1117_vm12 = vcmp.lt.f32.partialorder %v554_v21, 0.0004427343 }
  0x68   : > { %v539_v53 = vsub.f32 %v533_v15, %v537_v30  ;;  %v562_v54 = vmul.f32 %v869_v61, %v561_v38  ;;  %vm1125_vm13 = vcmp.lt.f32.partialorder %v563_v39, 0.0004427343 }
  0x6a   : > { %v871_v12 = vpop.eup %870 }
  0x6b   : > { %v873_v17 = vpop.eup %872  ;;  %v489_v18 = vmul.f32 0.6931472, %v871_v12 }
  0x6c   : > { %v875_v24 = vpop.eup %874  ;;  %v491_v25 = vmul.f32 0.6931472, %v873_v17 }
  0x6d   : > { %v877_v31 = vpop.eup %876  ;;  %v492_v32 = vsub.f32 0.0, %v489_v18  ;;  %v508_v33 = vmul.f32 0.6931472, %v875_v24 }
  0x6e   : > { %v493_v40 = vsub.f32 0.0, %v491_v25  ;;  %v517_v41 = vmul.f32 0.6931472, %v877_v31  ;;  %v879_v26 = vpop.eup %878 }
  0x6f   : > { %v494_v43 = vmul.f32 %v1064_v34, %v492_v32  ;;  %v514_v44 = vsel %vm1102_vm10, %v511_v19, %v508_v33  ;;  %v550_v49 = vmul.f32 0.6931472, %v879_v26  ;;  %v881_v50 = vpop.eup %880 }
  0x70   : > { %v495_v27 = vmul.f32 %v1066_v35, %v493_v40  ;;  %v523_v47 = vsel %vm1109_vm11, %v520_v28, %v517_v41  ;;  %v524_v48 = vadd.f32 %v514_v44, %v496_v9  ;;  %v559_v63 = vmul.f32 0.6931472, %v881_v50  ;;  %v742_v9 = vld [vmem:[%s1039_s28 + $0x28] sm:$0xff] }
  0x71   : > { %v525_v52 = vadd.f32 %v523_v47, %v497_v10  ;;  %v556_v59 = vsel %vm1117_vm12, %v553_v42, %v550_v49 }
  0x72   : > { %v581_v56 = vadd.f32 %v495_v27, %v494_v43  ;;  %v526_v57 = vsub.f32 %v524_v48, %v1084_v22  ;;  %v530_v58 = vmul.f32 %v1068_v36, %v524_v48  ;;  %v566_v61 = vadd.f32 %v556_v59, %v538_v45 }
  0x73   : > { %v527_v60 = vsub.f32 %v525_v52, %v1086_v23  ;;  %v531_v62 = vmul.f32 %v1070_v37, %v525_v52  ;;  %v565_v3 = vsel %vm1125_vm13, %v562_v54, %v559_v63  ;;  %v738_v23 = vld [vmem:[%s1039_s28 + $0x18] sm:$0xff] }
  0x74   : > { %v582_v0 = vadd.f32 %v736_v51, %v581_v56  ;;  %v528_v1 = vmul.f32 %v1064_v34, %v526_v57  ;;  %v567_v4 = vadd.f32 %v565_v3, %v539_v53  ;;  %v568_v37 = vmul.f32 %v1064_v34, %v566_v61 }
  0x75   : > { %v529_v22 = vmul.f32 %v1066_v35, %v527_v60  ;;  %v591_v36 = vadd.f32 %v531_v62, %v530_v58 }
  0x76   : > { %737 = vst [vmem:[%s1039_s28 + $0x10] sm:$0xff] %v582_v0  ;;  %v569_v7 = vmul.f32 %v1066_v35, %v567_v4 }
  0x77   : > { %v586_v5 = vadd.f32 %v529_v22, %v528_v1  ;;  %v592_v6 = vadd.f32 %v740_v2, %v591_v36 }
  0x78   : > { %v596_v10 = vadd.f32 %v569_v7, %v568_v37 }
  0x79   : > { %v587_v8 = vadd.f32 %v738_v23, %v586_v5  ;;  %741 = vst [vmem:[%s1039_s28 + $0x20] sm:$0xff] %v592_v6 }
  0x7a   : > { %v597_v11 = vadd.f32 %v742_v9, %v596_v10 }
  0x7b   : > { %739 = vst [vmem:[%s1039_s28 + $0x18] sm:$0xff] %v587_v8 }
  0x7c   : > { %743 = vst [vmem:[%s1039_s28 + $0x28] sm:$0xff] %v597_v11 }
  0x7d PF: > { %s12_s15 = sadd.s32 1, %s936_s15   ;;  %s1181_s9 = smov %s916_s10 }
  0x7e   : > { %p9_p12 = scmp.ge.s32.totalorder %s12_s15, 6   ;;  %s1182_s10 = smov %s1014_s25 }
  0x7f   : > { %s1183_s11 = smov %s928_s13  ;;  %s1184_s12 = smov %s932_s14 }
  0x80   : > { %s1185_s13 = smov %s1188_s16  ;;  %s1186_s14 = smov %s1192_s17 }
  0x81   :  { %11 = sbr.rel (!%p9_p12) target bundleno = 4 (0x4), region = 171 }

</bundles_post_ra>
